<compile_context>
chip_gen: v6e
topology: v6e:2x2x1
jax: 0.10.0
libtpu: 0.0.40
codegen_flags: <defaults>
</compile_context>

<pallas_src>
import jax
import jax.numpy as jnp
from jax import lax
from jax.experimental import pallas as pl
from jax.experimental.pallas import tpu as pltpu


def hypernet_kernel(
    cids_ref,          # SMEM (B_pad,) int32 — scalar-prefetched client ids
    emb_hbm,           # HBM  (client_num, E) — embedding table, never fully staged
    w1_ref, b1_ref,    # VMEM (H, E), (1, H)   PyTorch (out, in) layout
    w2_ref, b2_ref,    # VMEM (H, H), (1, H)
    w3_ref, b3_ref,    # VMEM (H, H), (1, H)
    wfc_ref,           # VMEM (num_blocks*client_num, H) — all fc heads stacked
    bfc_ref,           # VMEM (1, num_blocks*client_num)
    out_ref,           # VMEM (TILE_B, num_blocks*client_num)
    ebuf,              # VMEM scratch (TILE_B, E) — gathered embedding rows
    sem,               # DMA semaphores (TILE_B,)
):
    tile_b, _ = ebuf.shape
    base = pl.program_id(0) * tile_b

    # Gather only this tile's embedding rows from HBM (no full-table DMA).
    for r in range(tile_b):                       # static, small unrolled loop
        cid = cids_ref[base + r]
        pltpu.make_async_copy(
            emb_hbm.at[pl.ds(cid, 1), :], ebuf.at[pl.ds(r, 1), :], sem.at[r]
        ).start()
    for r in range(tile_b):
        pltpu.make_async_copy(
            emb_hbm.at[pl.ds(0, 1), :], ebuf.at[pl.ds(r, 1), :], sem.at[r]
        ).wait()

    # x @ W^T with PyTorch (out, in) weights: contract the last dim of both
    # operands (no wrapper transposes, no extra HBM traffic).
    dn = (((1,), (1,)), ((), ()))

    x = ebuf[...]                                                     # (TILE_B, E)
    h = lax.dot_general(x, w1_ref[...], dn, preferred_element_type=jnp.float32) + b1_ref[...]
    h = jnp.maximum(h, 0.0)
    h = lax.dot_general(h, w2_ref[...], dn, preferred_element_type=jnp.float32) + b2_ref[...]
    h = jnp.maximum(h, 0.0)
    h = lax.dot_general(h, w3_ref[...], dn, preferred_element_type=jnp.float32) + b3_ref[...]
    feat = jnp.maximum(h, 0.0)                                        # (TILE_B, H)

    # All fc heads fused into one MXU matmul; single lane-dense store.
    a = lax.dot_general(feat, wfc_ref[...], dn, preferred_element_type=jnp.float32) + bfc_ref[...]
    out_ref[...] = jnp.maximum(a, 0.0)            # (TILE_B, num_blocks*client_num)


def text_hypernetwork_forward(
    client_ids, emb_table,
    w1, b1, w2, b2, w3, b3,
    wfc, bfc,
    *, tile_b=8,
):
    """Batched hypernetwork forward.

    client_ids: (B,) int32
    emb_table : (client_num, E)
    w1: (H, E), w2/w3: (H, H), b*: (H,)   -- PyTorch (out, in) layout, untouched
    wfc: (num_blocks, client_num, H), bfc: (num_blocks, client_num)
    Returns (B, num_blocks, client_num) float32.
    """
    client_ids = jnp.asarray(client_ids, dtype=jnp.int32).reshape(-1)
    B = client_ids.shape[0]
    num_blocks, client_num, H = wfc.shape
    E = emb_table.shape[1]
    out_w = num_blocks * client_num

    # Pad batch to a multiple of tile_b (sublane multiple); padded rows use id 0.
    b_pad = int(pl.cdiv(B, tile_b)) * tile_b
    if b_pad != B:
        client_ids = jnp.concatenate(
            [client_ids, jnp.zeros((b_pad - B,), jnp.int32)], axis=0
        )

    # Free reshapes only (contiguous merges) — NO transposes, no HBM copies.
    wfc_flat = wfc.reshape(out_w, H)
    bfc_flat = bfc.reshape(1, out_w)
    b1r, b2r, b3r = b1.reshape(1, -1), b2.reshape(1, -1), b3.reshape(1, -1)

    vmem = lambda: pl.BlockSpec(memory_space=pltpu.VMEM)

    out = pl.pallas_call(
        hypernet_kernel,
        out_shape=jax.ShapeDtypeStruct((b_pad, out_w), jnp.float32),
        grid_spec=pltpu.PrefetchScalarGridSpec(
            num_scalar_prefetch=1,                 # client ids -> SMEM
            grid=(b_pad // tile_b,),
            in_specs=[
                pl.BlockSpec(memory_space=pl.ANY),  # embedding table stays in HBM
                vmem(), vmem(),                     # w1, b1
                vmem(), vmem(),                     # w2, b2
                vmem(), vmem(),                     # w3, b3
                vmem(), vmem(),                     # wfc_flat, bfc_flat
            ],
            out_specs=pl.BlockSpec((tile_b, out_w), lambda i, cids: (i, 0)),
            scratch_shapes=[
                pltpu.VMEM((tile_b, E), jnp.float32),
                pltpu.SemaphoreType.DMA((tile_b,)),
            ],
        ),
        compiler_params=pltpu.CompilerParams(
            dimension_semantics=("parallel",),      # batch tiles split across TCs
            vmem_limit_bytes=32 * 1024 * 1024,      # explicit for v7x's 64 MiB VMEM
        ),
    )(client_ids, emb_table, w1, b1r, w2, b2r, w3, b3r, wfc_flat, bfc_flat)

    return out[:B].reshape(B, num_blocks, client_num)


def text_hypernetwork_forward_single(
    client_id, block_names, emb_table, w1, b1, w2, b2, w3, b3, wfc, bfc
):
    """Module-style API: one client id -> dict of alpha vectors."""
    alphas = text_hypernetwork_forward(
        jnp.asarray([client_id], jnp.int32),
        emb_table, w1, b1, w2, b2, w3, b3, wfc, bfc,
    )[0]
    return {name: alphas[i] for i, name in enumerate(block_names)}


if __name__ == "__main__":
    # Small, deterministic shapes consistent with the module's __init__.
    EMBEDDING_DIM = 32
    HIDDEN_DIM = 32
    CLIENT_NUM = 8
    BLOCK_NAMES = ["attn", "mlp", "head"]   # stand-in for backbone block names
    NUM_BLOCKS = len(BLOCK_NAMES)

    key = jax.random.PRNGKey(0)
    keys = jax.random.split(key, 8)

    # nn.Embedding default init ~ N(0, 1)
    emb_table = jax.random.normal(keys[0], (CLIENT_NUM, EMBEDDING_DIM), jnp.float32)

    # nn.Linear layers of the mlp (deterministic synthetic init)
    w1 = jax.random.uniform(keys[1], (HIDDEN_DIM, EMBEDDING_DIM), jnp.float32, -0.1, 0.1)
    b1 = jnp.zeros((HIDDEN_DIM,), jnp.float32)
    w2 = jax.random.uniform(keys[2], (HIDDEN_DIM, HIDDEN_DIM), jnp.float32, -0.1, 0.1)
    b2 = jnp.zeros((HIDDEN_DIM,), jnp.float32)
    w3 = jax.random.uniform(keys[3], (HIDDEN_DIM, HIDDEN_DIM), jnp.float32, -0.1, 0.1)
    b3 = jnp.zeros((HIDDEN_DIM,), jnp.float32)

    # Custom Linear heads: weight ~ uniform(0, 1), bias = 0 (as in the module)
    wfc = jax.random.uniform(keys[4], (NUM_BLOCKS, CLIENT_NUM, HIDDEN_DIM), jnp.float32, 0.0, 1.0)
    bfc = jnp.zeros((NUM_BLOCKS, CLIENT_NUM), jnp.float32)

    # Batch of client ids (2 tiles of 8 -> grid=(2,), "parallel" across cores).
    client_ids = jnp.concatenate(
        [jnp.arange(CLIENT_NUM, dtype=jnp.int32),
         jnp.arange(CLIENT_NUM, dtype=jnp.int32)[::-1]]
    )

    alphas = text_hypernetwork_forward(
        client_ids, emb_table, w1, b1, w2, b2, w3, b3, wfc, bfc, tile_b=8
    )
    alphas = jax.block_until_ready(alphas)           # (B, NUM_BLOCKS, CLIENT_NUM)

    # Pure-JAX reference check (per id, exactly the module's math).
    def ref_forward(cid):
        emd = emb_table[cid][None, :]
        f = jnp.maximum(emd @ w1.T + b1, 0.0)
        f = jnp.maximum(f @ w2.T + b2, 0.0)
        f = jnp.maximum(f @ w3.T + b3, 0.0)
        return jnp.stack(
            [jnp.maximum(f @ wfc[i].T + bfc[i], 0.0)[0] for i in range(NUM_BLOCKS)],
            axis=0,
        )

    ref = jnp.stack([ref_forward(int(c)) for c in client_ids], axis=0)
    assert alphas.shape == (client_ids.shape[0], NUM_BLOCKS, CLIENT_NUM)
    assert jnp.allclose(alphas, ref, atol=1e-5), "mismatch vs reference"

    # Module-style dict output for a single client id.
    alpha = text_hypernetwork_forward_single(
        3, BLOCK_NAMES, emb_table, w1, b1, w2, b2, w3, b3, wfc, bfc
    )
    assert all(v.shape == (CLIENT_NUM,) for v in alpha.values())
    assert jnp.allclose(
        jnp.stack([alpha[n] for n in BLOCK_NAMES]), ref_forward(3), atol=1e-5
    )

    print("KERNEL_OK")
</pallas_src>

<mosaic_0001>
module attributes {stable_mosaic.version = 11 : i64} {
  func.func @hypernet_kernel(%arg0: i32, %arg1: memref<16xi32, #tpu.memory_space<smem>>, %arg2: memref<8x32xf32, #tpu.memory_space<any>>, %arg3: memref<32x32xf32, #tpu.memory_space<vmem>>, %arg4: memref<1x32xf32, #tpu.memory_space<vmem>>, %arg5: memref<32x32xf32, #tpu.memory_space<vmem>>, %arg6: memref<1x32xf32, #tpu.memory_space<vmem>>, %arg7: memref<32x32xf32, #tpu.memory_space<vmem>>, %arg8: memref<1x32xf32, #tpu.memory_space<vmem>>, %arg9: memref<24x32xf32, #tpu.memory_space<vmem>>, %arg10: memref<1x24xf32, #tpu.memory_space<vmem>>, %arg11: memref<8x24xf32, #tpu.memory_space<vmem>>, %arg12: memref<8x32xf32, #tpu.memory_space<vmem>>, %arg13: memref<8x!tpu.dma_semaphore, #tpu.memory_space<semaphore_mem>>) attributes {dimension_semantics = [#tpu.dimension_semantics<parallel>], iteration_bounds = array<i64: 2>, scalar_prefetch = 1 : i64, scratch_operands = 2 : i64, tpu.core_type = #tpu.core_type<tc>, window_params = [{}, {pipeline_mode = #tpu.pipeline_mode<synchronous>, transform_indices = @transform_1, window_bounds = array<i64: 32, 32>}, {pipeline_mode = #tpu.pipeline_mode<synchronous>, transform_indices = @transform_2, window_bounds = array<i64: 1, 32>}, {pipeline_mode = #tpu.pipeline_mode<synchronous>, transform_indices = @transform_3, window_bounds = array<i64: 32, 32>}, {pipeline_mode = #tpu.pipeline_mode<synchronous>, transform_indices = @transform_4, window_bounds = array<i64: 1, 32>}, {pipeline_mode = #tpu.pipeline_mode<synchronous>, transform_indices = @transform_5, window_bounds = array<i64: 32, 32>}, {pipeline_mode = #tpu.pipeline_mode<synchronous>, transform_indices = @transform_6, window_bounds = array<i64: 1, 32>}, {pipeline_mode = #tpu.pipeline_mode<synchronous>, transform_indices = @transform_7, window_bounds = array<i64: 24, 32>}, {pipeline_mode = #tpu.pipeline_mode<synchronous>, transform_indices = @transform_8, window_bounds = array<i64: 1, 24>}, {transform_indices = @transform_9, window_bounds = array<i64: 8, 24>}]} {
    %c8_i32 = arith.constant 8 : i32
    %0 = arith.muli %arg0, %c8_i32 : i32
    %c0_i32 = arith.constant 0 : i32
    %1 = arith.addi %0, %c0_i32 : i32
    %2 = arith.index_cast %1 : i32 to index
    %3 = memref.load %arg1[%2] : memref<16xi32, #tpu.memory_space<smem>>
    %c0_i32_0 = arith.constant 0 : i32
    %c0_i32_1 = arith.constant 0 : i32
    %4 = tpu.memref_slice %arg2[%3, %c0_i32_1] : memref<8x32xf32, #tpu.memory_space<any>> -> memref<1x32xf32, #tpu.memory_space<any>>
    %c0_i32_2 = arith.constant 0 : i32
    %c0_i32_3 = arith.constant 0 : i32
    %5 = tpu.memref_slice %arg12[%c0_i32_2, %c0_i32_3] : memref<8x32xf32, #tpu.memory_space<vmem>> -> memref<1x32xf32, #tpu.memory_space<vmem>>
    %6 = tpu.memref_slice %arg13[%c0_i32_0] : memref<8x!tpu.dma_semaphore, #tpu.memory_space<semaphore_mem>> -> memref<1x!tpu.dma_semaphore, #tpu.memory_space<semaphore_mem>>
    %7 = tpu.memref_squeeze %6 : memref<1x!tpu.dma_semaphore, #tpu.memory_space<semaphore_mem>> -> memref<!tpu.dma_semaphore, #tpu.memory_space<semaphore_mem>>
    tpu.enqueue_dma source(%4 : memref<1x32xf32, #tpu.memory_space<any>>) target(%5 : memref<1x32xf32, #tpu.memory_space<vmem>>) target_semaphore(%7 : memref<!tpu.dma_semaphore, #tpu.memory_space<semaphore_mem>>)
    %c1_i32 = arith.constant 1 : i32
    %8 = arith.addi %0, %c1_i32 : i32
    %9 = arith.index_cast %8 : i32 to index
    %10 = memref.load %arg1[%9] : memref<16xi32, #tpu.memory_space<smem>>
    %c1_i32_4 = arith.constant 1 : i32
    %c0_i32_5 = arith.constant 0 : i32
    %11 = tpu.memref_slice %arg2[%10, %c0_i32_5] : memref<8x32xf32, #tpu.memory_space<any>> -> memref<1x32xf32, #tpu.memory_space<any>>
    %c1_i32_6 = arith.constant 1 : i32
    %c0_i32_7 = arith.constant 0 : i32
    %12 = tpu.memref_slice %arg12[%c1_i32_6, %c0_i32_7] : memref<8x32xf32, #tpu.memory_space<vmem>> -> memref<1x32xf32, #tpu.memory_space<vmem>>
    %13 = tpu.memref_slice %arg13[%c1_i32_4] : memref<8x!tpu.dma_semaphore, #tpu.memory_space<semaphore_mem>> -> memref<1x!tpu.dma_semaphore, #tpu.memory_space<semaphore_mem>>
    %14 = tpu.memref_squeeze %13 : memref<1x!tpu.dma_semaphore, #tpu.memory_space<semaphore_mem>> -> memref<!tpu.dma_semaphore, #tpu.memory_space<semaphore_mem>>
    tpu.enqueue_dma source(%11 : memref<1x32xf32, #tpu.memory_space<any>>) target(%12 : memref<1x32xf32, #tpu.memory_space<vmem>>) target_semaphore(%14 : memref<!tpu.dma_semaphore, #tpu.memory_space<semaphore_mem>>)
    %c2_i32 = arith.constant 2 : i32
    %15 = arith.addi %0, %c2_i32 : i32
    %16 = arith.index_cast %15 : i32 to index
    %17 = memref.load %arg1[%16] : memref<16xi32, #tpu.memory_space<smem>>
    %c2_i32_8 = arith.constant 2 : i32
    %c0_i32_9 = arith.constant 0 : i32
    %18 = tpu.memref_slice %arg2[%17, %c0_i32_9] : memref<8x32xf32, #tpu.memory_space<any>> -> memref<1x32xf32, #tpu.memory_space<any>>
    %c2_i32_10 = arith.constant 2 : i32
    %c0_i32_11 = arith.constant 0 : i32
    %19 = tpu.memref_slice %arg12[%c2_i32_10, %c0_i32_11] : memref<8x32xf32, #tpu.memory_space<vmem>> -> memref<1x32xf32, #tpu.memory_space<vmem>>
    %20 = tpu.memref_slice %arg13[%c2_i32_8] : memref<8x!tpu.dma_semaphore, #tpu.memory_space<semaphore_mem>> -> memref<1x!tpu.dma_semaphore, #tpu.memory_space<semaphore_mem>>
    %21 = tpu.memref_squeeze %20 : memref<1x!tpu.dma_semaphore, #tpu.memory_space<semaphore_mem>> -> memref<!tpu.dma_semaphore, #tpu.memory_space<semaphore_mem>>
    tpu.enqueue_dma source(%18 : memref<1x32xf32, #tpu.memory_space<any>>) target(%19 : memref<1x32xf32, #tpu.memory_space<vmem>>) target_semaphore(%21 : memref<!tpu.dma_semaphore, #tpu.memory_space<semaphore_mem>>)
    %c3_i32 = arith.constant 3 : i32
    %22 = arith.addi %0, %c3_i32 : i32
    %23 = arith.index_cast %22 : i32 to index
    %24 = memref.load %arg1[%23] : memref<16xi32, #tpu.memory_space<smem>>
    %c3_i32_12 = arith.constant 3 : i32
    %c0_i32_13 = arith.constant 0 : i32
    %25 = tpu.memref_slice %arg2[%24, %c0_i32_13] : memref<8x32xf32, #tpu.memory_space<any>> -> memref<1x32xf32, #tpu.memory_space<any>>
    %c3_i32_14 = arith.constant 3 : i32
    %c0_i32_15 = arith.constant 0 : i32
    %26 = tpu.memref_slice %arg12[%c3_i32_14, %c0_i32_15] : memref<8x32xf32, #tpu.memory_space<vmem>> -> memref<1x32xf32, #tpu.memory_space<vmem>>
    %27 = tpu.memref_slice %arg13[%c3_i32_12] : memref<8x!tpu.dma_semaphore, #tpu.memory_space<semaphore_mem>> -> memref<1x!tpu.dma_semaphore, #tpu.memory_space<semaphore_mem>>
    %28 = tpu.memref_squeeze %27 : memref<1x!tpu.dma_semaphore, #tpu.memory_space<semaphore_mem>> -> memref<!tpu.dma_semaphore, #tpu.memory_space<semaphore_mem>>
    tpu.enqueue_dma source(%25 : memref<1x32xf32, #tpu.memory_space<any>>) target(%26 : memref<1x32xf32, #tpu.memory_space<vmem>>) target_semaphore(%28 : memref<!tpu.dma_semaphore, #tpu.memory_space<semaphore_mem>>)
    %c4_i32 = arith.constant 4 : i32
    %29 = arith.addi %0, %c4_i32 : i32
    %30 = arith.index_cast %29 : i32 to index
    %31 = memref.load %arg1[%30] : memref<16xi32, #tpu.memory_space<smem>>
    %c4_i32_16 = arith.constant 4 : i32
    %c0_i32_17 = arith.constant 0 : i32
    %32 = tpu.memref_slice %arg2[%31, %c0_i32_17] : memref<8x32xf32, #tpu.memory_space<any>> -> memref<1x32xf32, #tpu.memory_space<any>>
    %c4_i32_18 = arith.constant 4 : i32
    %c0_i32_19 = arith.constant 0 : i32
    %33 = tpu.memref_slice %arg12[%c4_i32_18, %c0_i32_19] : memref<8x32xf32, #tpu.memory_space<vmem>> -> memref<1x32xf32, #tpu.memory_space<vmem>>
    %34 = tpu.memref_slice %arg13[%c4_i32_16] : memref<8x!tpu.dma_semaphore, #tpu.memory_space<semaphore_mem>> -> memref<1x!tpu.dma_semaphore, #tpu.memory_space<semaphore_mem>>
    %35 = tpu.memref_squeeze %34 : memref<1x!tpu.dma_semaphore, #tpu.memory_space<semaphore_mem>> -> memref<!tpu.dma_semaphore, #tpu.memory_space<semaphore_mem>>
    tpu.enqueue_dma source(%32 : memref<1x32xf32, #tpu.memory_space<any>>) target(%33 : memref<1x32xf32, #tpu.memory_space<vmem>>) target_semaphore(%35 : memref<!tpu.dma_semaphore, #tpu.memory_space<semaphore_mem>>)
    %c5_i32 = arith.constant 5 : i32
    %36 = arith.addi %0, %c5_i32 : i32
    %37 = arith.index_cast %36 : i32 to index
    %38 = memref.load %arg1[%37] : memref<16xi32, #tpu.memory_space<smem>>
    %c5_i32_20 = arith.constant 5 : i32
    %c0_i32_21 = arith.constant 0 : i32
    %39 = tpu.memref_slice %arg2[%38, %c0_i32_21] : memref<8x32xf32, #tpu.memory_space<any>> -> memref<1x32xf32, #tpu.memory_space<any>>
    %c5_i32_22 = arith.constant 5 : i32
    %c0_i32_23 = arith.constant 0 : i32
    %40 = tpu.memref_slice %arg12[%c5_i32_22, %c0_i32_23] : memref<8x32xf32, #tpu.memory_space<vmem>> -> memref<1x32xf32, #tpu.memory_space<vmem>>
    %41 = tpu.memref_slice %arg13[%c5_i32_20] : memref<8x!tpu.dma_semaphore, #tpu.memory_space<semaphore_mem>> -> memref<1x!tpu.dma_semaphore, #tpu.memory_space<semaphore_mem>>
    %42 = tpu.memref_squeeze %41 : memref<1x!tpu.dma_semaphore, #tpu.memory_space<semaphore_mem>> -> memref<!tpu.dma_semaphore, #tpu.memory_space<semaphore_mem>>
    tpu.enqueue_dma source(%39 : memref<1x32xf32, #tpu.memory_space<any>>) target(%40 : memref<1x32xf32, #tpu.memory_space<vmem>>) target_semaphore(%42 : memref<!tpu.dma_semaphore, #tpu.memory_space<semaphore_mem>>)
    %c6_i32 = arith.constant 6 : i32
    %43 = arith.addi %0, %c6_i32 : i32
    %44 = arith.index_cast %43 : i32 to index
    %45 = memref.load %arg1[%44] : memref<16xi32, #tpu.memory_space<smem>>
    %c6_i32_24 = arith.constant 6 : i32
    %c0_i32_25 = arith.constant 0 : i32
    %46 = tpu.memref_slice %arg2[%45, %c0_i32_25] : memref<8x32xf32, #tpu.memory_space<any>> -> memref<1x32xf32, #tpu.memory_space<any>>
    %c6_i32_26 = arith.constant 6 : i32
    %c0_i32_27 = arith.constant 0 : i32
    %47 = tpu.memref_slice %arg12[%c6_i32_26, %c0_i32_27] : memref<8x32xf32, #tpu.memory_space<vmem>> -> memref<1x32xf32, #tpu.memory_space<vmem>>
    %48 = tpu.memref_slice %arg13[%c6_i32_24] : memref<8x!tpu.dma_semaphore, #tpu.memory_space<semaphore_mem>> -> memref<1x!tpu.dma_semaphore, #tpu.memory_space<semaphore_mem>>
    %49 = tpu.memref_squeeze %48 : memref<1x!tpu.dma_semaphore, #tpu.memory_space<semaphore_mem>> -> memref<!tpu.dma_semaphore, #tpu.memory_space<semaphore_mem>>
    tpu.enqueue_dma source(%46 : memref<1x32xf32, #tpu.memory_space<any>>) target(%47 : memref<1x32xf32, #tpu.memory_space<vmem>>) target_semaphore(%49 : memref<!tpu.dma_semaphore, #tpu.memory_space<semaphore_mem>>)
    %c7_i32 = arith.constant 7 : i32
    %50 = arith.addi %0, %c7_i32 : i32
    %51 = arith.index_cast %50 : i32 to index
    %52 = memref.load %arg1[%51] : memref<16xi32, #tpu.memory_space<smem>>
    %c7_i32_28 = arith.constant 7 : i32
    %c0_i32_29 = arith.constant 0 : i32
    %53 = tpu.memref_slice %arg2[%52, %c0_i32_29] : memref<8x32xf32, #tpu.memory_space<any>> -> memref<1x32xf32, #tpu.memory_space<any>>
    %c7_i32_30 = arith.constant 7 : i32
    %c0_i32_31 = arith.constant 0 : i32
    %54 = tpu.memref_slice %arg12[%c7_i32_30, %c0_i32_31] : memref<8x32xf32, #tpu.memory_space<vmem>> -> memref<1x32xf32, #tpu.memory_space<vmem>>
    %55 = tpu.memref_slice %arg13[%c7_i32_28] : memref<8x!tpu.dma_semaphore, #tpu.memory_space<semaphore_mem>> -> memref<1x!tpu.dma_semaphore, #tpu.memory_space<semaphore_mem>>
    %56 = tpu.memref_squeeze %55 : memref<1x!tpu.dma_semaphore, #tpu.memory_space<semaphore_mem>> -> memref<!tpu.dma_semaphore, #tpu.memory_space<semaphore_mem>>
    tpu.enqueue_dma source(%53 : memref<1x32xf32, #tpu.memory_space<any>>) target(%54 : memref<1x32xf32, #tpu.memory_space<vmem>>) target_semaphore(%56 : memref<!tpu.dma_semaphore, #tpu.memory_space<semaphore_mem>>)
    %c0_i32_32 = arith.constant 0 : i32
    %c0_i32_33 = arith.constant 0 : i32
    %c0_i32_34 = arith.constant 0 : i32
    %57 = tpu.memref_slice %arg2[%c0_i32_33, %c0_i32_34] : memref<8x32xf32, #tpu.memory_space<any>> -> memref<1x32xf32, #tpu.memory_space<any>>
    %c0_i32_35 = arith.constant 0 : i32
    %c0_i32_36 = arith.constant 0 : i32
    %58 = tpu.memref_slice %arg12[%c0_i32_35, %c0_i32_36] : memref<8x32xf32, #tpu.memory_space<vmem>> -> memref<1x32xf32, #tpu.memory_space<vmem>>
    %59 = tpu.memref_slice %arg13[%c0_i32_32] : memref<8x!tpu.dma_semaphore, #tpu.memory_space<semaphore_mem>> -> memref<1x!tpu.dma_semaphore, #tpu.memory_space<semaphore_mem>>
    %60 = tpu.memref_squeeze %59 : memref<1x!tpu.dma_semaphore, #tpu.memory_space<semaphore_mem>> -> memref<!tpu.dma_semaphore, #tpu.memory_space<semaphore_mem>>
    tpu.wait_dma2 semaphore(%60 : memref<!tpu.dma_semaphore, #tpu.memory_space<semaphore_mem>>) src(%57 : memref<1x32xf32, #tpu.memory_space<any>>) dst(%58 : memref<1x32xf32, #tpu.memory_space<vmem>>)
    %c1_i32_37 = arith.constant 1 : i32
    %c0_i32_38 = arith.constant 0 : i32
    %c0_i32_39 = arith.constant 0 : i32
    %61 = tpu.memref_slice %arg2[%c0_i32_38, %c0_i32_39] : memref<8x32xf32, #tpu.memory_space<any>> -> memref<1x32xf32, #tpu.memory_space<any>>
    %c1_i32_40 = arith.constant 1 : i32
    %c0_i32_41 = arith.constant 0 : i32
    %62 = tpu.memref_slice %arg12[%c1_i32_40, %c0_i32_41] : memref<8x32xf32, #tpu.memory_space<vmem>> -> memref<1x32xf32, #tpu.memory_space<vmem>>
    %63 = tpu.memref_slice %arg13[%c1_i32_37] : memref<8x!tpu.dma_semaphore, #tpu.memory_space<semaphore_mem>> -> memref<1x!tpu.dma_semaphore, #tpu.memory_space<semaphore_mem>>
    %64 = tpu.memref_squeeze %63 : memref<1x!tpu.dma_semaphore, #tpu.memory_space<semaphore_mem>> -> memref<!tpu.dma_semaphore, #tpu.memory_space<semaphore_mem>>
    tpu.wait_dma2 semaphore(%64 : memref<!tpu.dma_semaphore, #tpu.memory_space<semaphore_mem>>) src(%61 : memref<1x32xf32, #tpu.memory_space<any>>) dst(%62 : memref<1x32xf32, #tpu.memory_space<vmem>>)
    %c2_i32_42 = arith.constant 2 : i32
    %c0_i32_43 = arith.constant 0 : i32
    %c0_i32_44 = arith.constant 0 : i32
    %65 = tpu.memref_slice %arg2[%c0_i32_43, %c0_i32_44] : memref<8x32xf32, #tpu.memory_space<any>> -> memref<1x32xf32, #tpu.memory_space<any>>
    %c2_i32_45 = arith.constant 2 : i32
    %c0_i32_46 = arith.constant 0 : i32
    %66 = tpu.memref_slice %arg12[%c2_i32_45, %c0_i32_46] : memref<8x32xf32, #tpu.memory_space<vmem>> -> memref<1x32xf32, #tpu.memory_space<vmem>>
    %67 = tpu.memref_slice %arg13[%c2_i32_42] : memref<8x!tpu.dma_semaphore, #tpu.memory_space<semaphore_mem>> -> memref<1x!tpu.dma_semaphore, #tpu.memory_space<semaphore_mem>>
    %68 = tpu.memref_squeeze %67 : memref<1x!tpu.dma_semaphore, #tpu.memory_space<semaphore_mem>> -> memref<!tpu.dma_semaphore, #tpu.memory_space<semaphore_mem>>
    tpu.wait_dma2 semaphore(%68 : memref<!tpu.dma_semaphore, #tpu.memory_space<semaphore_mem>>) src(%65 : memref<1x32xf32, #tpu.memory_space<any>>) dst(%66 : memref<1x32xf32, #tpu.memory_space<vmem>>)
    %c3_i32_47 = arith.constant 3 : i32
    %c0_i32_48 = arith.constant 0 : i32
    %c0_i32_49 = arith.constant 0 : i32
    %69 = tpu.memref_slice %arg2[%c0_i32_48, %c0_i32_49] : memref<8x32xf32, #tpu.memory_space<any>> -> memref<1x32xf32, #tpu.memory_space<any>>
    %c3_i32_50 = arith.constant 3 : i32
    %c0_i32_51 = arith.constant 0 : i32
    %70 = tpu.memref_slice %arg12[%c3_i32_50, %c0_i32_51] : memref<8x32xf32, #tpu.memory_space<vmem>> -> memref<1x32xf32, #tpu.memory_space<vmem>>
    %71 = tpu.memref_slice %arg13[%c3_i32_47] : memref<8x!tpu.dma_semaphore, #tpu.memory_space<semaphore_mem>> -> memref<1x!tpu.dma_semaphore, #tpu.memory_space<semaphore_mem>>
    %72 = tpu.memref_squeeze %71 : memref<1x!tpu.dma_semaphore, #tpu.memory_space<semaphore_mem>> -> memref<!tpu.dma_semaphore, #tpu.memory_space<semaphore_mem>>
    tpu.wait_dma2 semaphore(%72 : memref<!tpu.dma_semaphore, #tpu.memory_space<semaphore_mem>>) src(%69 : memref<1x32xf32, #tpu.memory_space<any>>) dst(%70 : memref<1x32xf32, #tpu.memory_space<vmem>>)
    %c4_i32_52 = arith.constant 4 : i32
    %c0_i32_53 = arith.constant 0 : i32
    %c0_i32_54 = arith.constant 0 : i32
    %73 = tpu.memref_slice %arg2[%c0_i32_53, %c0_i32_54] : memref<8x32xf32, #tpu.memory_space<any>> -> memref<1x32xf32, #tpu.memory_space<any>>
    %c4_i32_55 = arith.constant 4 : i32
    %c0_i32_56 = arith.constant 0 : i32
    %74 = tpu.memref_slice %arg12[%c4_i32_55, %c0_i32_56] : memref<8x32xf32, #tpu.memory_space<vmem>> -> memref<1x32xf32, #tpu.memory_space<vmem>>
    %75 = tpu.memref_slice %arg13[%c4_i32_52] : memref<8x!tpu.dma_semaphore, #tpu.memory_space<semaphore_mem>> -> memref<1x!tpu.dma_semaphore, #tpu.memory_space<semaphore_mem>>
    %76 = tpu.memref_squeeze %75 : memref<1x!tpu.dma_semaphore, #tpu.memory_space<semaphore_mem>> -> memref<!tpu.dma_semaphore, #tpu.memory_space<semaphore_mem>>
    tpu.wait_dma2 semaphore(%76 : memref<!tpu.dma_semaphore, #tpu.memory_space<semaphore_mem>>) src(%73 : memref<1x32xf32, #tpu.memory_space<any>>) dst(%74 : memref<1x32xf32, #tpu.memory_space<vmem>>)
    %c5_i32_57 = arith.constant 5 : i32
    %c0_i32_58 = arith.constant 0 : i32
    %c0_i32_59 = arith.constant 0 : i32
    %77 = tpu.memref_slice %arg2[%c0_i32_58, %c0_i32_59] : memref<8x32xf32, #tpu.memory_space<any>> -> memref<1x32xf32, #tpu.memory_space<any>>
    %c5_i32_60 = arith.constant 5 : i32
    %c0_i32_61 = arith.constant 0 : i32
    %78 = tpu.memref_slice %arg12[%c5_i32_60, %c0_i32_61] : memref<8x32xf32, #tpu.memory_space<vmem>> -> memref<1x32xf32, #tpu.memory_space<vmem>>
    %79 = tpu.memref_slice %arg13[%c5_i32_57] : memref<8x!tpu.dma_semaphore, #tpu.memory_space<semaphore_mem>> -> memref<1x!tpu.dma_semaphore, #tpu.memory_space<semaphore_mem>>
    %80 = tpu.memref_squeeze %79 : memref<1x!tpu.dma_semaphore, #tpu.memory_space<semaphore_mem>> -> memref<!tpu.dma_semaphore, #tpu.memory_space<semaphore_mem>>
    tpu.wait_dma2 semaphore(%80 : memref<!tpu.dma_semaphore, #tpu.memory_space<semaphore_mem>>) src(%77 : memref<1x32xf32, #tpu.memory_space<any>>) dst(%78 : memref<1x32xf32, #tpu.memory_space<vmem>>)
    %c6_i32_62 = arith.constant 6 : i32
    %c0_i32_63 = arith.constant 0 : i32
    %c0_i32_64 = arith.constant 0 : i32
    %81 = tpu.memref_slice %arg2[%c0_i32_63, %c0_i32_64] : memref<8x32xf32, #tpu.memory_space<any>> -> memref<1x32xf32, #tpu.memory_space<any>>
    %c6_i32_65 = arith.constant 6 : i32
    %c0_i32_66 = arith.constant 0 : i32
    %82 = tpu.memref_slice %arg12[%c6_i32_65, %c0_i32_66] : memref<8x32xf32, #tpu.memory_space<vmem>> -> memref<1x32xf32, #tpu.memory_space<vmem>>
    %83 = tpu.memref_slice %arg13[%c6_i32_62] : memref<8x!tpu.dma_semaphore, #tpu.memory_space<semaphore_mem>> -> memref<1x!tpu.dma_semaphore, #tpu.memory_space<semaphore_mem>>
    %84 = tpu.memref_squeeze %83 : memref<1x!tpu.dma_semaphore, #tpu.memory_space<semaphore_mem>> -> memref<!tpu.dma_semaphore, #tpu.memory_space<semaphore_mem>>
    tpu.wait_dma2 semaphore(%84 : memref<!tpu.dma_semaphore, #tpu.memory_space<semaphore_mem>>) src(%81 : memref<1x32xf32, #tpu.memory_space<any>>) dst(%82 : memref<1x32xf32, #tpu.memory_space<vmem>>)
    %c7_i32_67 = arith.constant 7 : i32
    %c0_i32_68 = arith.constant 0 : i32
    %c0_i32_69 = arith.constant 0 : i32
    %85 = tpu.memref_slice %arg2[%c0_i32_68, %c0_i32_69] : memref<8x32xf32, #tpu.memory_space<any>> -> memref<1x32xf32, #tpu.memory_space<any>>
    %c7_i32_70 = arith.constant 7 : i32
    %c0_i32_71 = arith.constant 0 : i32
    %86 = tpu.memref_slice %arg12[%c7_i32_70, %c0_i32_71] : memref<8x32xf32, #tpu.memory_space<vmem>> -> memref<1x32xf32, #tpu.memory_space<vmem>>
    %87 = tpu.memref_slice %arg13[%c7_i32_67] : memref<8x!tpu.dma_semaphore, #tpu.memory_space<semaphore_mem>> -> memref<1x!tpu.dma_semaphore, #tpu.memory_space<semaphore_mem>>
    %88 = tpu.memref_squeeze %87 : memref<1x!tpu.dma_semaphore, #tpu.memory_space<semaphore_mem>> -> memref<!tpu.dma_semaphore, #tpu.memory_space<semaphore_mem>>
    tpu.wait_dma2 semaphore(%88 : memref<!tpu.dma_semaphore, #tpu.memory_space<semaphore_mem>>) src(%85 : memref<1x32xf32, #tpu.memory_space<any>>) dst(%86 : memref<1x32xf32, #tpu.memory_space<vmem>>)
    %c0 = arith.constant 0 : index
    %c0_72 = arith.constant 0 : index
    %89 = vector.load %arg12[%c0, %c0_72] : memref<8x32xf32, #tpu.memory_space<vmem>>, vector<8x32xf32>
    %c0_73 = arith.constant 0 : index
    %c0_74 = arith.constant 0 : index
    %90 = vector.load %arg3[%c0_73, %c0_74] : memref<32x32xf32, #tpu.memory_space<vmem>>, vector<32x32xf32>
    %cst = arith.constant dense<0.000000e+00> : vector<8x32xf32>
    %91 = tpu.matmul %89, %90, %cst {dimension_numbers = #tpu.dot_dimension_numbers<[1], [1], [0], [0], [0, 0, 1, 0], [], []>} : vector<8x32xf32>, vector<32x32xf32>, vector<8x32xf32> -> vector<8x32xf32>
    %c0_75 = arith.constant 0 : index
    %c0_76 = arith.constant 0 : index
    %92 = vector.load %arg4[%c0_75, %c0_76] : memref<1x32xf32, #tpu.memory_space<vmem>>, vector<1x32xf32>
    %93 = vector.broadcast %92 : vector<1x32xf32> to vector<8x32xf32>
    %94 = arith.addf %91, %93 : vector<8x32xf32>
    %cst_77 = arith.constant 0.000000e+00 : f32
    %95 = vector.broadcast %cst_77 : f32 to vector<8x32xf32>
    %96 = arith.maximumf %94, %95 : vector<8x32xf32>
    %c0_78 = arith.constant 0 : index
    %c0_79 = arith.constant 0 : index
    %97 = vector.load %arg5[%c0_78, %c0_79] : memref<32x32xf32, #tpu.memory_space<vmem>>, vector<32x32xf32>
    %cst_80 = arith.constant dense<0.000000e+00> : vector<8x32xf32>
    %98 = tpu.matmul %96, %97, %cst_80 {dimension_numbers = #tpu.dot_dimension_numbers<[1], [1], [0], [0], [0, 0, 1, 0], [], []>} : vector<8x32xf32>, vector<32x32xf32>, vector<8x32xf32> -> vector<8x32xf32>
    %c0_81 = arith.constant 0 : index
    %c0_82 = arith.constant 0 : index
    %99 = vector.load %arg6[%c0_81, %c0_82] : memref<1x32xf32, #tpu.memory_space<vmem>>, vector<1x32xf32>
    %100 = vector.broadcast %99 : vector<1x32xf32> to vector<8x32xf32>
    %101 = arith.addf %98, %100 : vector<8x32xf32>
    %cst_83 = arith.constant 0.000000e+00 : f32
    %102 = vector.broadcast %cst_83 : f32 to vector<8x32xf32>
    %103 = arith.maximumf %101, %102 : vector<8x32xf32>
    %c0_84 = arith.constant 0 : index
    %c0_85 = arith.constant 0 : index
    %104 = vector.load %arg7[%c0_84, %c0_85] : memref<32x32xf32, #tpu.memory_space<vmem>>, vector<32x32xf32>
    %cst_86 = arith.constant dense<0.000000e+00> : vector<8x32xf32>
    %105 = tpu.matmul %103, %104, %cst_86 {dimension_numbers = #tpu.dot_dimension_numbers<[1], [1], [0], [0], [0, 0, 1, 0], [], []>} : vector<8x32xf32>, vector<32x32xf32>, vector<8x32xf32> -> vector<8x32xf32>
    %c0_87 = arith.constant 0 : index
    %c0_88 = arith.constant 0 : index
    %106 = vector.load %arg8[%c0_87, %c0_88] : memref<1x32xf32, #tpu.memory_space<vmem>>, vector<1x32xf32>
    %107 = vector.broadcast %106 : vector<1x32xf32> to vector<8x32xf32>
    %108 = arith.addf %105, %107 : vector<8x32xf32>
    %cst_89 = arith.constant 0.000000e+00 : f32
    %109 = vector.broadcast %cst_89 : f32 to vector<8x32xf32>
    %110 = arith.maximumf %108, %109 : vector<8x32xf32>
    %c0_90 = arith.constant 0 : index
    %c0_91 = arith.constant 0 : index
    %111 = vector.load %arg9[%c0_90, %c0_91] : memref<24x32xf32, #tpu.memory_space<vmem>>, vector<24x32xf32>
    %cst_92 = arith.constant dense<0.000000e+00> : vector<8x24xf32>
    %112 = tpu.matmul %110, %111, %cst_92 {dimension_numbers = #tpu.dot_dimension_numbers<[1], [1], [0], [0], [0, 0, 1, 0], [], []>} : vector<8x32xf32>, vector<24x32xf32>, vector<8x24xf32> -> vector<8x24xf32>
    %c0_93 = arith.constant 0 : index
    %c0_94 = arith.constant 0 : index
    %113 = vector.load %arg10[%c0_93, %c0_94] : memref<1x24xf32, #tpu.memory_space<vmem>>, vector<1x24xf32>
    %114 = vector.broadcast %113 : vector<1x24xf32> to vector<8x24xf32>
    %115 = arith.addf %112, %114 : vector<8x24xf32>
    %cst_95 = arith.constant 0.000000e+00 : f32
    %116 = vector.broadcast %cst_95 : f32 to vector<8x24xf32>
    %117 = arith.maximumf %115, %116 : vector<8x24xf32>
    %c0_96 = arith.constant 0 : index
    %c0_97 = arith.constant 0 : index
    %118 = vector.load %arg11[%c0_96, %c0_97] : memref<8x24xf32, #tpu.memory_space<vmem>>, vector<8x24xf32>
    tpu.vector_store %arg11[%c0_96, %c0_97], %117 {strides = array<i32>} : memref<8x24xf32, #tpu.memory_space<vmem>>, vector<8x24xf32>,
    return
  }
  func.func @transform_1(%arg0: i32, %arg1: memref<16xi32, #tpu.memory_space<smem>>) -> (i32, i32) {
    %c0_i32 = arith.constant 0 : i32
    %c0_i32_0 = arith.constant 0 : i32
    %c0_i32_1 = arith.constant 0 : i32
    return %c0_i32, %c0_i32_0 : i32, i32
  }
  func.func @transform_2(%arg0: i32, %arg1: memref<16xi32, #tpu.memory_space<smem>>) -> (i32, i32) {
    %c0_i32 = arith.constant 0 : i32
    %c0_i32_0 = arith.constant 0 : i32
    %c0_i32_1 = arith.constant 0 : i32
    return %c0_i32, %c0_i32_0 : i32, i32
  }
  func.func @transform_3(%arg0: i32, %arg1: memref<16xi32, #tpu.memory_space<smem>>) -> (i32, i32) {
    %c0_i32 = arith.constant 0 : i32
    %c0_i32_0 = arith.constant 0 : i32
    %c0_i32_1 = arith.constant 0 : i32
    return %c0_i32, %c0_i32_0 : i32, i32
  }
  func.func @transform_4(%arg0: i32, %arg1: memref<16xi32, #tpu.memory_space<smem>>) -> (i32, i32) {
    %c0_i32 = arith.constant 0 : i32
    %c0_i32_0 = arith.constant 0 : i32
    %c0_i32_1 = arith.constant 0 : i32
    return %c0_i32, %c0_i32_0 : i32, i32
  }
  func.func @transform_5(%arg0: i32, %arg1: memref<16xi32, #tpu.memory_space<smem>>) -> (i32, i32) {
    %c0_i32 = arith.constant 0 : i32
    %c0_i32_0 = arith.constant 0 : i32
    %c0_i32_1 = arith.constant 0 : i32
    return %c0_i32, %c0_i32_0 : i32, i32
  }
  func.func @transform_6(%arg0: i32, %arg1: memref<16xi32, #tpu.memory_space<smem>>) -> (i32, i32) {
    %c0_i32 = arith.constant 0 : i32
    %c0_i32_0 = arith.constant 0 : i32
    %c0_i32_1 = arith.constant 0 : i32
    return %c0_i32, %c0_i32_0 : i32, i32
  }
  func.func @transform_7(%arg0: i32, %arg1: memref<16xi32, #tpu.memory_space<smem>>) -> (i32, i32) {
    %c0_i32 = arith.constant 0 : i32
    %c0_i32_0 = arith.constant 0 : i32
    %c0_i32_1 = arith.constant 0 : i32
    return %c0_i32, %c0_i32_0 : i32, i32
  }
  func.func @transform_8(%arg0: i32, %arg1: memref<16xi32, #tpu.memory_space<smem>>) -> (i32, i32) {
    %c0_i32 = arith.constant 0 : i32
    %c0_i32_0 = arith.constant 0 : i32
    %c0_i32_1 = arith.constant 0 : i32
    return %c0_i32, %c0_i32_0 : i32, i32
  }
  func.func @transform_9(%arg0: i32, %arg1: memref<16xi32, #tpu.memory_space<smem>>) -> (i32, i32) {
    %c0_i32 = arith.constant 0 : i32
    %c0_i32_0 = arith.constant 0 : i32
    return %arg0, %c0_i32 : i32, i32
  }
}

</mosaic_0001>

<bundles_post_ra>
// kernel: tpu_custom_call.1
= control target key start
LH: loop header
LB: loop body
LE: loop exit
PB: predicated region body
PF: predicated region fallthrough
CT: control target
= control target key end

     0   :  { %s1651_s13 = smov [#allocation5]   ;;  %s2052_s0 = inlined_call_operand.hbm [shape: s32[16], index: 0, kind: input, shape index: {}]   ;;  %s2053_s1 = inlined_call_operand.hbm [shape: f32[8,32], index: 1, kind: input, shape index: {}]   ;;  %s2054_s2 = inlined_call_operand.hbm [shape: f32[32,32], index: 2, kind: input, shape index: {}]   ;;  %s2055_s3 = inlined_call_operand.vmem [shape: f32[1,32], index: 3, kind: input, shape index: {}]   ;;  %s2056_s4 = inlined_call_operand.hbm [shape: f32[32,32], index: 4, kind: input, shape index: {}]   ;;  %s2057_s5 = inlined_call_operand.vmem [shape: f32[1,32], index: 5, kind: input, shape index: {}]   ;;  %s2058_s6 = inlined_call_operand.hbm [shape: f32[32,32], index: 6, kind: input, shape index: {}]   ;;  %s2059_s7 = inlined_call_operand.vmem [shape: f32[1,32], index: 7, kind: input, shape index: {}]   ;;  %s2060_s8 = inlined_call_operand.hbm [shape: f32[24,32], index: 8, kind: input, shape index: {}]   ;;  %s2061_s9 = inlined_call_operand.vmem [shape: f32[1,24], index: 9, kind: input, shape index: {}]   ;;  %s2062_s10 = inlined_call_operand.hbm [shape: f32[16,24], index: 10, kind: output, shape index: {}]  }
   0x1   :  { %2069 = sst [smem:[#allocation51_spill]] %s2054_s2 }
   0x2   :  { %2070 = sst [smem:[#allocation52_spill]] %s2056_s4 }
   0x3   :  { %2071 = sst [smem:[#allocation53_spill]] %s2058_s6 }
   0x4   :  { %2072 = sst [smem:[#allocation54_spill]] %s2060_s8 }
   0x5   :  { %16 = dma.hbm_to_smem %s2052_s0, 16, %s1651_s13, [#allocation4] }
   0x6   :  { %1601 = dma.done.wait [#allocation4], 16 }
   0x7   :  { %1602 = vsyncadd [#allocation4], 4294967280 }
   0x8   :  { %18 = sfence }
   0x9   :  { %19 = vsyncpa [#allocation7], 0 }
   0xa   :  { %20 = vsyncpa [#allocation10], 0 }
   0xb   :  { %21 = vsyncpa [#allocation13], 0 }
   0xc   :  { %22 = vsyncpa [#allocation8], 0 }
   0xd   :  { %24 = vsyncpa [#allocation8 + $0x1], 0  ;;  %s1727_s16 = smov 0   ;;  %s1729_s17 = smov 0  }
   0xe   :  { %s1731_s18 = smov 0   ;;  %s1733_s19 = smov 0  }
   0xf LB: > { %2073 = sst [smem:[#allocation46_spill]] %s1637_s16  ;;  %s1748_s0 = sadd.s32 4294967295, %s1649_s19   ;;  %s1649_s19 = sphi %s1733_s19, %s2089_s19   ;;  %s1645_s18 = sphi %s1731_s18, %s2091_s18   ;;  %s1641_s17 = sphi %s1729_s17, %s2093_s17   ;;  %s1637_s16 = sphi %s1727_s16, %s2092_s16  }
  0x10   : > { %2074 = sst [smem:[#allocation47_spill]] %s1645_s18  ;;  %s1061_s20 = sadd.s32 4294967294, %s1649_s19  }
  0x11   : > { %s1752_s21 = sadd.s32 1, %s1649_s19   ;;  %s205_s22 = sadd.s32 1, %s1645_s18 }
  0x12   : > { %2075 = sst [smem:[#allocation48_spill]] %s1752_s21  ;;  %s202_s23 = ssub.s32 %s1649_s19, %s1752_s21 }
  0x13   : > { %p215_p0 = scmp.ne.s32.totalorder %s1645_s18, %s1641_s17  ;;  %p203_p1 = scmp.eq.s32.totalorder %s202_s23, 0 }
  0x14   : > { %p216_p2 = scmp.eq.s32.totalorder %s1748_s0, 1  ;;  %p221_p3 = scmp.ne.s32.totalorder %s1641_s17, %s1637_s16 }
  0x15   : > { %p222_p4 = scmp.eq.s32.totalorder %s1061_s20, 1  ;;  %p1062_p7 = scmp.ge.s32.totalorder %s1649_s19, 1 }
  0x16   : > { %s1763_s24 = scalar_select %p203_p1, %s1645_s18, %s205_s22  }
  0x17   : > { %p1765_p5 = por %p216_p2, %p215_p0  ;;  %p1769_p6 = por %p222_p4, %p221_p3 }
  0x18   : > { %2076 = sst [smem:[#allocation49_spill]] %s1763_s24  ;;  %p229_p8 = scmp.lt.s32.totalorder %s1649_s19, 3 }
  0x19   : > { %s2078_s26 = scalar_select %p1769_p6, 1, 0 }
  0x1a   : > { %p1213_p9 = scmp.eq.s32.totalorder %s1748_s0, 0  ;;  %p1776_p10 = pnand %p1062_p7, %p229_p8 }
  0x1b   : > { %2079 = sst [smem:[#allocation50_spill]] %s2078_s26  ;;  %s1652_s28 = smov [#allocation9]  }
  0x1c   : > { %p1196_p11 = pneg %p1776_p10  ;;  %s257_s29 = sshll.u32 %s1652_s28, 4  ;;  %s258_s29 = int_to_ptr.vmem [resolvable:$true] %s257_s29 }
  0x1d   : > { %s1653_s11 = smov [#allocation6]   ;;  %s1654_s13 = smov [#allocation11]  }
  0x1e   : > { %p1784_p12 = pnand %p1213_p9, %p1196_p11  ;;  %s241_s12 = sshll.u32 %s1653_s11, 4  ;;  %s242_s12 = int_to_ptr.vmem [resolvable:$true] %s241_s12 }
  0x1f   : > { %s273_s14 = sshll.u32 %s1654_s13, 4  ;;  %s1290_s15 = scalar_lea.vmem %s258_s29, 512  ;;  %s274_s14 = int_to_ptr.vmem [resolvable:$true] %s273_s14 }
  0x20   : > { %p1281_p13 = pneg %p1784_p12  ;;  %p1291_p0 = scmp.ne.s32.totalorder %s258_s29, %s1290_s15 }
  0x21   : > { %p1298_p3 = scmp.lt.s32.totalorder %s258_s29, %s258_s29  ;;  %p1299_p4 = scmp.lt.s32.totalorder %s1290_s15, %s1290_s15 }
  0x22   : > { %p1293_p1 = pnand %p1291_p0, %p1281_p13 }
  0x23   : > { %p1300_p7 = por %p1299_p4, %p1298_p3 }
  0x24   : > { %p1294_p2 = pneg %p1293_p1 }
  0x26   : > { %p1301_p8 = pnand %p1300_p7, %p1294_p2 }
  0x28   : > { %1304 = shalt.err (!%p1301_p8)
}
  0x29   : > { %s1655_s20 = smov 128   ;;  %s1656_s22 = smov 8  }
  0x2a   : > { %s2082_s4 = sld [smem:[#allocation52_spill]]  ;;  %s1316_s11 = scalar_lea.vmem %s242_s12, 512 }
  0x2b   : > { %p1317_p11 = scmp.ne.s32.totalorder %s242_s12, %s1316_s11  ;;  %p1324_p2 = scmp.lt.s32.totalorder %s242_s12, %s242_s12 }
  0x2c   : > { %p1325_p3 = scmp.lt.s32.totalorder %s1316_s11, %s1316_s11 }
  0x2d   : > { %p1319_p0 = pnand %p1317_p11, %p1281_p13 }
  0x2e   : > { %p1326_p4 = por %p1325_p3, %p1324_p2 }
  0x2f   : > { %p1320_p1 = pneg %p1319_p0 }
  0x30   : > { %1202 = dma.hbm_to_vmem [thread:$0]  (!%p1784_p12), %s2082_s4, 512, %s258_s29, [#allocation10], %s1655_s20, %s1655_s20, %s1656_s22  }
  0x31   : > { %p1327_p7 = pnand %p1326_p4, %p1320_p1 }
  0x33   : > { %1330 = shalt.err (!%p1327_p7)
}
  0x34   : > { %s2083_s2 = sld [smem:[#allocation51_spill]]  ;;  %s1342_s29 = scalar_lea.vmem %s274_s14, 512 }
  0x35   : > { %p1343_p8 = scmp.ne.s32.totalorder %s274_s14, %s1342_s29  ;;  %p1350_p2 = scmp.lt.s32.totalorder %s274_s14, %s274_s14 }
  0x36   : > { %p1351_p1 = scmp.lt.s32.totalorder %s1342_s29, %s1342_s29 }
  0x37   : > { %p1345_p11 = pnand %p1343_p8, %p1281_p13 }
  0x38   : > { %p1352_p3 = por %p1351_p1, %p1350_p2 }
  0x39   : > { %p1346_p0 = pneg %p1345_p11 }
  0x3a   : > { %1199 = dma.hbm_to_vmem [thread:$0]  (!%p1784_p12), %s2083_s2, 512, %s242_s12, [#allocation7], %s1655_s20, %s1655_s20, %s1656_s22  }
  0x3b   : > { %p1353_p4 = pnand %p1352_p3, %p1346_p0 }
  0x3d   : > { %1356 = shalt.err (!%p1353_p4)
}
  0x3e   : > { %s2084_s6 = sld [smem:[#allocation53_spill]]  ;;  %s1657_s12 = smov [#allocation12]  }
  0x3f   : > { %s289_s11 = sshll.u32 %s1657_s12, 4  ;;  %s290_s11 = int_to_ptr.vmem [resolvable:$true] %s289_s11 }
  0x40   : > { %s1368_s13 = scalar_lea.vmem %s290_s11, 384  ;;  %p1376_p0 = scmp.lt.s32.totalorder %s290_s11, %s290_s11 }
  0x41   : > { %p1369_p7 = scmp.ne.s32.totalorder %s290_s11, %s1368_s13  ;;  %p1377_p2 = scmp.lt.s32.totalorder %s1368_s13, %s1368_s13 }
  0x43   : > { %p1371_p8 = pnand %p1369_p7, %p1281_p13  ;;  %p1378_p1 = por %p1377_p2, %p1376_p0 }
  0x44   : > { %1205 = dma.hbm_to_vmem [thread:$0]  (!%p1784_p12), %s2084_s6, 512, %s274_s14, [#allocation10], %s1655_s20, %s1655_s20, %s1656_s22  }
  0x45   : > { %p1372_p11 = pneg %p1371_p8 }
  0x47   : > { %p1379_p3 = pnand %p1378_p1, %p1372_p11 }
  0x49   : > { %1382 = shalt.err (!%p1379_p3)
}
  0x4a   : > { %s2085_s8 = sld [smem:[#allocation54_spill]] }
  0x4c   : > { %308 = sbr.rel (%p1776_p10) target bundleno = 1086 (0x43e), region = 52 }
  0x50   : > { %1208 = dma.hbm_to_vmem [thread:$0]  (!%p1784_p12), %s2085_s8, 384, %s290_s11, [#allocation13], %s1655_s20, %s1655_s20, %s1656_s22  }
  0x51   : > { %1604 = dma.done.wait (%p1213_p9), [#allocation7], 512  }
  0x52   : > { %1606 = vsyncadd (%p1213_p9), [#allocation7], 4294966784 }
  0x53   : > { %1608 = dma.done.wait (%p1213_p9), [#allocation10], 1024  }
  0x54   : > { %1610 = vsyncadd (%p1213_p9), [#allocation10], 4294966272 }
  0x55   : > { %1612 = dma.done.wait (%p1213_p9), [#allocation13], 384  }
  0x56   : > { %1614 = vsyncadd (%p1213_p9), [#allocation13], 4294966912  ;;  %s2063_s27 = sand.u32 1, %s1641_s17   ;;  %s1850_s30 = sshll.u32 %s1748_s0, 3 }
  0x57   : > { %s1854_s20 = sshll.u32 %s2063_s27, 3  ;;  %s350_s22 = sld [smem:[#allocation5 + %s1850_s30]] }
  0x58   : > { %s1658_s29 = smov [#allocation2]   ;;  %s364_s28 = sadd.s32 1, %s1850_s30 }
  0x59   : > { %s360_s23 = sshll.u32 %s1658_s29, 4  ;;  %s1860_s12 = sld [smem:[#allocation5 + %s364_s28]]  ;;  %s1858_s23 = int_to_ptr.vmem [resolvable:$true] %s360_s23 }
  0x5a   : > { %s381_s11 = sadd.s32 2, %s1850_s30  ;;  %s1659_s13 = smov [#allocation2 + $0x1]  }
  0x5b   : > { %s377_s14 = sshll.u32 %s1659_s13, 4  ;;  %s1863_s15 = sld [smem:[#allocation5 + %s381_s11]]  ;;  %s1865_s14 = int_to_ptr.vmem [resolvable:$true] %s377_s14 }
  0x5c   : > { %s1873_s18 = scalar_lea.hbm %s2053_s1, 128 }
  0x5d   : > { %s1074_s2 = sshll.u32 %s350_s22, 4 }
  0x5e   : > { %s352_s27 = scalar_lea.hbm %s2053_s1, %s1074_s2 }
  0x5f   : > { %s1383_s8 = scalar_lea.hbm %s352_s27, 16  ;;  %p1386_p10 = scmp.lt.s32.totalorder %s352_s27, %s2053_s1 }
  0x60   : > { %p1384_p9 = scmp.ne.s32.totalorder %s352_s27, %s1383_s8  ;;  %p1387_p12 = scmp.lt.s32.totalorder %s1873_s18, %s1383_s8 }
  0x62   : > { %p1388_p13 = por %p1387_p12, %p1386_p10 }
  0x64   : > { %p1389_p4 = pnand %p1388_p13, %p1384_p9 }
  0x66   : > { %1392 = shalt.err (!%p1389_p4)  }
  0x67   : > { %s1393_s2 = scalar_lea.vmem %s1858_s23, 16  ;;  %s1882_s4 = scalar_lea.vmem %s1858_s23, 128 }
  0x68   : > { %p1394_p7 = scmp.ne.s32.totalorder %s1858_s23, %s1393_s2  ;;  %p1398_p8 = scmp.lt.s32.totalorder %s1858_s23, %s1858_s23 }
  0x69   : > { %p1399_p11 = scmp.lt.s32.totalorder %s1882_s4, %s1393_s2 }
  0x6b   : > { %p1400_p0 = por %p1399_p11, %p1398_p8 }
  0x6d   : > { %p1401_p2 = pnand %p1400_p0, %p1394_p7 }
  0x6f   : > { %1404 = shalt.err (!%p1401_p2)  }
  0x70   : > { %363 = dma.hbm_to_vmem [thread:$0]  %s352_s27, 16, %s1858_s23, [#allocation3] }
  0x71   : > { %s1075_s6 = sshll.u32 %s1860_s12, 4  ;;  %s1660_s8 = smov [#allocation2 + $0x2]  }
  0x72   : > { %s394_s21 = sshll.u32 %s1660_s8, 4  ;;  %s367_s11 = scalar_lea.hbm %s2053_s1, %s1075_s6  ;;  %s1892_s21 = int_to_ptr.vmem [resolvable:$true] %s394_s21 }
  0x73   : > { %s1405_s13 = scalar_lea.hbm %s367_s11, 16  ;;  %p1408_p3 = scmp.lt.s32.totalorder %s367_s11, %s2053_s1 }
  0x74   : > { %p1406_p1 = scmp.ne.s32.totalorder %s367_s11, %s1405_s13  ;;  %p1409_p9 = scmp.lt.s32.totalorder %s1873_s18, %s1405_s13 }
  0x76   : > { %p1410_p10 = por %p1409_p9, %p1408_p3 }
  0x78   : > { %p1411_p12 = pnand %p1410_p10, %p1406_p1 }
  0x7a   : > { %1414 = shalt.err (!%p1411_p12)  }
  0x7b   : > { %s1415_s27 = scalar_lea.vmem %s1865_s14, 16  ;;  %p1420_p4 = scmp.lt.s32.totalorder %s1865_s14, %s1858_s23 }
  0x7c   : > { %p1416_p13 = scmp.ne.s32.totalorder %s1865_s14, %s1415_s27  ;;  %p1421_p7 = scmp.lt.s32.totalorder %s1882_s4, %s1415_s27 }
  0x7e   : > { %p1422_p8 = por %p1421_p7, %p1420_p4 }
  0x80   : > { %p1423_p11 = pnand %p1422_p8, %p1416_p13 }
  0x82   : > { %1426 = shalt.err (!%p1423_p11)  }
  0x83   : > { %380 = dma.hbm_to_vmem [thread:$0]  %s367_s11, 16, %s1865_s14, [#allocation3 + $0x1] }
  0x84   : > { %s1076_s12 = sshll.u32 %s1863_s15, 4  ;;  %s398_s2 = sadd.s32 3, %s1850_s30 }
  0x85   : > { %s384_s24 = scalar_lea.hbm %s2053_s1, %s1076_s12  ;;  %s399_s22 = sld [smem:[#allocation5 + %s398_s2]] }
  0x86   : > { %s1427_s13 = scalar_lea.hbm %s384_s24, 16  ;;  %p1430_p2 = scmp.lt.s32.totalorder %s384_s24, %s2053_s1 }
  0x87   : > { %p1428_p0 = scmp.ne.s32.totalorder %s384_s24, %s1427_s13  ;;  %p1431_p1 = scmp.lt.s32.totalorder %s1873_s18, %s1427_s13 }
  0x89   : > { %p1432_p3 = por %p1431_p1, %p1430_p2 }
  0x8b   : > { %p1433_p9 = pnand %p1432_p3, %p1428_p0 }
  0x8d   : > { %1436 = shalt.err (!%p1433_p9)  }
  0x8e   : > { %s1437_s14 = scalar_lea.vmem %s1892_s21, 16  ;;  %p1442_p12 = scmp.lt.s32.totalorder %s1892_s21, %s1858_s23 }
  0x8f   : > { %p1438_p10 = scmp.ne.s32.totalorder %s1892_s21, %s1437_s14  ;;  %p1443_p13 = scmp.lt.s32.totalorder %s1882_s4, %s1437_s14 }
  0x91   : > { %p1444_p4 = por %p1443_p13, %p1442_p12 }
  0x93   : > { %p1445_p7 = pnand %p1444_p4, %p1438_p10 }
  0x95   : > { %1448 = shalt.err (!%p1445_p7)  }
  0x96   : > { %397 = dma.hbm_to_vmem [thread:$0]  %s384_s24, 16, %s1892_s21, [#allocation3 + $0x2] }
  0x97   : > { %s415_s15 = sadd.s32 4, %s1850_s30  ;;  %s1661_s11 = smov [#allocation2 + $0x3]  }
  0x98   : > { %s411_s27 = sshll.u32 %s1661_s11, 4  ;;  %s416_s12 = sld [smem:[#allocation5 + %s415_s15]]  ;;  %s412_s27 = int_to_ptr.vmem [resolvable:$true] %s411_s27 }
  0x99   : > { %s1662_s2 = smov [#allocation2 + $0x4]   ;;  %s432_s8 = sadd.s32 5, %s1850_s30 }
  0x9a   : > { %s428_s6 = sshll.u32 %s1662_s2, 4  ;;  %s1077_s13 = sshll.u32 %s399_s22, 4  ;;  %s1921_s6 = int_to_ptr.vmem [resolvable:$true] %s428_s6 }
  0x9b   : > { %s401_s14 = scalar_lea.hbm %s2053_s1, %s1077_s13  ;;  %s1926_s26 = sld [smem:[#allocation5 + %s432_s8]] }
  0x9c   : > { %s1449_s16 = scalar_lea.hbm %s401_s14, 16  ;;  %p1452_p11 = scmp.lt.s32.totalorder %s401_s14, %s2053_s1 }
  0x9d   : > { %p1450_p8 = scmp.ne.s32.totalorder %s401_s14, %s1449_s16  ;;  %p1453_p0 = scmp.lt.s32.totalorder %s1873_s18, %s1449_s16 }
  0x9f   : > { %p1454_p2 = por %p1453_p0, %p1452_p11 }
  0xa1   : > { %p1455_p1 = pnand %p1454_p2, %p1450_p8 }
  0xa3   : > { %1458 = shalt.err (!%p1455_p1)  }
  0xa4   : > { %s1459_s15 = scalar_lea.vmem %s412_s27, 16  ;;  %p1464_p9 = scmp.lt.s32.totalorder %s412_s27, %s1858_s23 }
  0xa5   : > { %p1460_p3 = scmp.ne.s32.totalorder %s412_s27, %s1459_s15  ;;  %p1465_p10 = scmp.lt.s32.totalorder %s1882_s4, %s1459_s15 }
  0xa7   : > { %p1466_p12 = por %p1465_p10, %p1464_p9 }
  0xa9   : > { %p1467_p13 = pnand %p1466_p12, %p1460_p3 }
  0xab   : > { %1470 = shalt.err (!%p1467_p13)  }
  0xac   : > { %414 = dma.hbm_to_vmem [thread:$0]  %s401_s14, 16, %s412_s27, [#allocation3 + $0x3] }
  0xad   : > { %s1078_s22 = sshll.u32 %s416_s12, 4  ;;  %s1663_s16 = smov [#allocation2 + $0x5]  }
  0xae   : > { %s418_s8 = scalar_lea.hbm %s2053_s1, %s1078_s22  ;;  %s445_s13 = sshll.u32 %s1663_s16, 4  ;;  %s446_s13 = int_to_ptr.vmem [resolvable:$true] %s445_s13 }
  0xaf   : > { %s1471_s29 = scalar_lea.hbm %s418_s8, 16  ;;  %p1474_p7 = scmp.lt.s32.totalorder %s418_s8, %s2053_s1 }
  0xb0   : > { %p1472_p4 = scmp.ne.s32.totalorder %s418_s8, %s1471_s29  ;;  %p1475_p8 = scmp.lt.s32.totalorder %s1873_s18, %s1471_s29 }
  0xb2   : > { %p1476_p11 = por %p1475_p8, %p1474_p7 }
  0xb4   : > { %p1477_p0 = pnand %p1476_p11, %p1472_p4 }
  0xb6   : > { %1480 = shalt.err (!%p1477_p0)  }
  0xb7   : > { %s1481_s27 = scalar_lea.vmem %s1921_s6, 16  ;;  %p1486_p1 = scmp.lt.s32.totalorder %s1921_s6, %s1858_s23 }
  0xb8   : > { %p1482_p2 = scmp.ne.s32.totalorder %s1921_s6, %s1481_s27  ;;  %p1487_p3 = scmp.lt.s32.totalorder %s1882_s4, %s1481_s27 }
  0xba   : > { %p1488_p9 = por %p1487_p3, %p1486_p1 }
  0xbc   : > { %p1489_p10 = pnand %p1488_p9, %p1482_p2 }
  0xbe   : > { %1492 = shalt.err (!%p1489_p10)  }
  0xbf   : > { %431 = dma.hbm_to_vmem [thread:$0]  %s418_s8, 16, %s1921_s6, [#allocation3 + $0x4] }
  0xc0   : > { %s449_s12 = sadd.s32 6, %s1850_s30  ;;  %s1079_s14 = sshll.u32 %s1926_s26, 4 }
  0xc1   : > { %s450_s24 = sld [smem:[#allocation5 + %s449_s12]]  ;;  %s435_s11 = scalar_lea.hbm %s2053_s1, %s1079_s14 }
  0xc2   : > { %s1493_s2 = scalar_lea.hbm %s435_s11, 16  ;;  %p1496_p13 = scmp.lt.s32.totalorder %s435_s11, %s2053_s1 }
  0xc3   : > { %p1494_p12 = scmp.ne.s32.totalorder %s435_s11, %s1493_s2  ;;  %p1497_p4 = scmp.lt.s32.totalorder %s1873_s18, %s1493_s2 }
  0xc5   : > { %p1498_p7 = por %p1497_p4, %p1496_p13 }
  0xc7   : > { %p1499_p8 = pnand %p1498_p7, %p1494_p12 }
  0xc9   : > { %1502 = shalt.err (!%p1499_p8)  }
  0xca   : > { %s1503_s28 = scalar_lea.vmem %s446_s13, 16  ;;  %p1508_p0 = scmp.lt.s32.totalorder %s446_s13, %s1858_s23 }
  0xcb   : > { %p1504_p11 = scmp.ne.s32.totalorder %s446_s13, %s1503_s28  ;;  %p1509_p2 = scmp.lt.s32.totalorder %s1882_s4, %s1503_s28 }
  0xcd   : > { %p1510_p1 = por %p1509_p2, %p1508_p0 }
  0xcf   : > { %p1511_p3 = pnand %p1510_p1, %p1504_p11 }
  0xd1   : > { %1514 = shalt.err (!%p1511_p3)  }
  0xd2   : > { %448 = dma.hbm_to_vmem [thread:$0]  %s435_s11, 16, %s446_s13, [#allocation3 + $0x5] }
  0xd3   : > { %s1664_s26 = smov [#allocation2 + $0x6]   ;;  %s466_s8 = sadd.s32 7, %s1850_s30 }
  0xd4   : > { %s462_s6 = sshll.u32 %s1664_s26, 4  ;;  %s467_s21 = sld [smem:[#allocation5 + %s466_s8]]  ;;  %s463_s6 = int_to_ptr.vmem [resolvable:$true] %s462_s6 }
  0xd5   : > { %s1080_s27 = sshll.u32 %s450_s24, 4  ;;  %s1665_s12 = smov [#allocation2 + $0x7]  }
  0xd6   : > { %s479_s14 = sshll.u32 %s1665_s12, 4  ;;  %s452_s2 = scalar_lea.hbm %s2053_s1, %s1080_s27  ;;  %s480_s14 = int_to_ptr.vmem [resolvable:$true] %s479_s14 }
  0xd7   : > { %s1515_s16 = scalar_lea.hbm %s452_s2, 16  ;;  %p1518_p10 = scmp.lt.s32.totalorder %s452_s2, %s2053_s1 }
  0xd8   : > { %p1516_p9 = scmp.ne.s32.totalorder %s452_s2, %s1515_s16  ;;  %p1519_p12 = scmp.lt.s32.totalorder %s1873_s18, %s1515_s16 }
  0xda   : > { %p1520_p13 = por %p1519_p12, %p1518_p10 }
  0xdc   : > { %p1521_p4 = pnand %p1520_p13, %p1516_p9 }
  0xde   : > { %1524 = shalt.err (!%p1521_p4)  }
  0xdf   : > { %s1525_s30 = scalar_lea.vmem %s463_s6, 16  ;;  %p1530_p8 = scmp.lt.s32.totalorder %s463_s6, %s1858_s23 }
  0xe0   : > { %p1526_p7 = scmp.ne.s32.totalorder %s463_s6, %s1525_s30  ;;  %p1531_p11 = scmp.lt.s32.totalorder %s1882_s4, %s1525_s30 }
  0xe2   : > { %p1532_p0 = por %p1531_p11, %p1530_p8 }
  0xe4   : > { %p1533_p2 = pnand %p1532_p0, %p1526_p7 }
  0xe6   : > { %1536 = shalt.err (!%p1533_p2)  }
  0xe7   : > { %465 = dma.hbm_to_vmem [thread:$0]  %s452_s2, 16, %s463_s6, [#allocation3 + $0x6] }
  0xe8   : > { %s1081_s13 = sshll.u32 %s467_s21, 4 }
  0xe9   : > { %s469_s26 = scalar_lea.hbm %s2053_s1, %s1081_s13 }
  0xea   : > { %s1537_s8 = scalar_lea.hbm %s469_s26, 16  ;;  %p1540_p3 = scmp.lt.s32.totalorder %s469_s26, %s2053_s1 }
  0xeb   : > { %p1538_p1 = scmp.ne.s32.totalorder %s469_s26, %s1537_s8  ;;  %p1541_p9 = scmp.lt.s32.totalorder %s1873_s18, %s1537_s8 }
  0xed   : > { %p1542_p10 = por %p1541_p9, %p1540_p3 }
  0xef   : > { %p1543_p12 = pnand %p1542_p10, %p1538_p1 }
  0xf1   : > { %1546 = shalt.err (!%p1543_p12)  }
  0xf2   : > { %s1547_s15 = scalar_lea.vmem %s480_s14, 16  ;;  %p1552_p4 = scmp.lt.s32.totalorder %s480_s14, %s1858_s23 }
  0xf3   : > { %p1548_p13 = scmp.ne.s32.totalorder %s480_s14, %s1547_s15  ;;  %p1553_p7 = scmp.lt.s32.totalorder %s1882_s4, %s1547_s15 }
  0xf5   : > { %p1554_p8 = por %p1553_p7, %p1552_p4 }
  0xf7   : > { %p1555_p11 = pnand %p1554_p8, %p1548_p13 }
  0xf9   : > { %1558 = shalt.err (!%p1555_p11)  }
  0xfa   : > { %482 = dma.hbm_to_vmem [thread:$0]  %s469_s26, 16, %s480_s14, [#allocation3 + $0x7] }
  0xfb   : > { %s348_s6 = scalar_lea.vmem [#allocation14], %s1854_s20 }
  0xfc   : > { %1615 = dma.done.wait [#allocation3], 16 }
  0xfd   : > { %1616 = vsyncadd [#allocation3], 4294967280 }
  0xfe   : > { %1617 = dma.done.wait [#allocation3 + $0x1], 16 }
  0xff   : > { %1618 = vsyncadd [#allocation3 + $0x1], 4294967280 }
 0x100   : > { %1619 = dma.done.wait [#allocation3 + $0x2], 16 }
 0x101   : > { %1620 = vsyncadd [#allocation3 + $0x2], 4294967280 }
 0x102   : > { %1621 = dma.done.wait [#allocation3 + $0x3], 16 }
 0x103   : > { %1622 = vsyncadd [#allocation3 + $0x3], 4294967280 }
 0x104   : > { %1623 = dma.done.wait [#allocation3 + $0x4], 16 }
 0x105   : > { %1624 = vsyncadd [#allocation3 + $0x4], 4294967280 }
 0x106   : > { %1625 = dma.done.wait [#allocation3 + $0x5], 16 }
 0x107   : > { %1626 = vsyncadd [#allocation3 + $0x5], 4294967280 }
 0x108   : > { %1627 = dma.done.wait [#allocation3 + $0x6], 16 }
 0x109   : > { %1628 = vsyncadd [#allocation3 + $0x6], 4294967280 }
 0x10a   : > { %1629 = dma.done.wait [#allocation3 + $0x7], 16 }
 0x10b   : > { %1630 = vsyncadd [#allocation3 + $0x7], 4294967280  ;;  %v1666_v0 = vmov 0.0   ;;  %vm1667_vm0 = vmmov 0   ;;  %vm512_vm1 = vcmask 261120   ;;  %v504_v1 = vld [vmem:[#allocation6 + $0x18] sm:$0xff] }
 0x10c   : > { %1136 = vmatprep.subr.mxu0 %v1666_v0  ;;  %1144 = vmatprep.mubr.msk.f32.mxu0 %vm1667_vm0, %v1666_v0  ;;  %v602_v2 = vld [vmem:[#allocation9 + $0x18] sm:$0xff]  ;;  %v503_v3 = vld [vmem:[#allocation6 + $0x10] sm:$0xff]  ;;  %v502_v5 = vld [vmem:[#allocation6 + $0x8] sm:$0xff]  ;;  %s1106_s29 = sshll.u32 %s1748_s0, 7  ;;  %s902_s28 = sshll.u32 %s348_s6, 4  ;;  %vm886_vm2 = vcmask 195584   ;;  %s903_s28 = int_to_ptr.vmem [resolvable:$true] %s902_s28 }
 0x10d   : > { %1147 = vmatprep.subr.mxu1 %v1666_v0  ;;  %1155 = vmatprep.mubr.msk.f32.mxu1 %vm1667_vm0, %v1666_v0  ;;  %v601_v4 = vld [vmem:[#allocation9 + $0x10] sm:$0xff]  ;;  %v600_v6 = vld [vmem:[#allocation9 + $0x8] sm:$0xff]  ;;  %v501_v7 = vld [vmem:[#allocation6] sm:$0xff]  ;;  %s900_s24 = scalar_lea.hbm %s2062_s10, %s1106_s29  ;;  %s2086_s11 = sand.u32 1, %s1641_s17  }
 0x10e   : > { %1137 = vmatpush3.xpose.msk.msra.mxu0 %vm512_vm1, %v504_v1  ;;  %1148 = vmatpush3.xpose.msk.msra.mxu1 %vm512_vm1, %v602_v2  ;;  %v500_v8 = vld [vmem:[#allocation2] sm:$0xff]  ;;  %v599_v9 = vld [vmem:[#allocation9] sm:$0xff]  ;;  %v698_v11 = vld [vmem:[#allocation11 + $0x10] sm:$0xff]  ;;  %s889_s26 = scalar_lea.sflag [#allocation8], %s2086_s11  ;;  %s1559_s8 = scalar_lea.vmem %s903_s28, 128 }
 0x10f   : > { %1138 = vmatprep.subr.mxu0 %v1666_v0  ;;  %1149 = vmatprep.subr.mxu1 %v1666_v0  ;;  %v699_v10 = vld [vmem:[#allocation11 + $0x18] sm:$0xff]  ;;  %v697_v12 = vld [vmem:[#allocation11 + $0x8] sm:$0xff]  ;;  %v696_v18 = vld [vmem:[#allocation11] sm:$0xff]  ;;  %p1560_p0 = scmp.ne.s32.totalorder %s903_s28, %s1559_s8  ;;  %s1668_s0 = smov [#allocation14]  }
 0x110   : > { %v1082_v13 = vld [vmem:[%s2055_s3] ss:$0 sm:$0xff]  ;;  %v795_v19 = vld [vmem:[#allocation12 + $0x10] sm:$0xff]  ;;  %v794_v20 = vld [vmem:[#allocation12 + $0x8] sm:$0xff]  ;;  %s1563_s27 = sshll.u32 %s1668_s0, 4  ;;  %s1564_s27 = int_to_ptr.vmem [resolvable:$false] %s1563_s27 }
 0x111   : > { %v1088_v21 = vld [vmem:[%s2057_s5] ss:$0 sm:$0xff]  ;;  %v793_v26 = vld [vmem:[#allocation12] sm:$0xff]  ;;  %p1561_p2 = pnand %p1560_p0, %p1765_p5  ;;  %s1565_s12 = scalar_lea.vmem %s1564_s27, 256 }
 0x112   : > { %1139 = vmatpush3.xpose.msk.msra.mxu0 %vm512_vm1, %v503_v3  ;;  %1150 = vmatpush3.xpose.msk.msra.mxu1 %vm512_vm1, %v601_v4  ;;  %v1094_v27 = vld [vmem:[%s2059_s7] ss:$0 sm:$0xff]  ;;  %p1566_p3 = scmp.lt.s32.totalorder %s903_s28, %s1564_s27  ;;  %p1567_p9 = scmp.lt.s32.totalorder %s1565_s12, %s1559_s8 }
 0x113   : > { %1140 = vmatprep.subr.mxu0 %v1666_v0  ;;  %1151 = vmatprep.subr.mxu1 %v1666_v0  ;;  %v1100_v32 = vld [vmem:[%s2061_s9] ss:$0 sm:$0xff]  ;;  %p1562_p1 = pneg %p1561_p2 }
 0x114   : > { %p1568_p10 = por %p1567_p9, %p1566_p3 }
 0x116   : > { %1141 = vmatpush3.xpose.msk.msra.mxu0 %vm512_vm1, %v502_v5  ;;  %1152 = vmatpush3.xpose.msk.msra.mxu1 %vm512_vm1, %v600_v6  ;;  %p1569_p12 = pnand %p1568_p10, %p1562_p1 }
 0x117   : > { %1142 = vmatprep.subr.mxu0 %v1666_v0  ;;  %1153 = vmatprep.subr.mxu1 %v1666_v0 }
 0x11a   : > { %1143 = vmatpush3.xpose.msk.msra.mxu0 %vm512_vm1, %v501_v7  ;;  %1154 = vmatpush3.xpose.msk.msra.mxu1 %vm512_vm1, %v599_v9 }
 0x11b   : > { %1158 = vmatprep.subr.mxu0 %v1666_v0  ;;  %1169 = vmatprep.subr.mxu1 %v1666_v0 }
 0x11d   : > { %1145 = vmatmul.mubr.msk.f32.vlgmr.msra.gmra.mxu0 %vm512_vm1, %v500_v8 }
 0x11e   : > { %1166 = vmatprep.mubr.msk.f32.mxu0 %vm1667_vm0, %v1666_v0  ;;  %1159 = vmatpush3.xpose.msk.msra.mxu0 %vm512_vm1, %v699_v10 }
 0x11f   : > { %1160 = vmatprep.subr.mxu0 %v1666_v0 }
 0x122   : > { %1161 = vmatpush3.xpose.msk.msra.mxu0 %vm512_vm1, %v698_v11 }
 0x123   : > { %1162 = vmatprep.subr.mxu0 %v1666_v0 }
 0x126   : > { %1163 = vmatpush3.xpose.msk.msra.mxu0 %vm512_vm1, %v697_v12 }
 0x127   : > { %1164 = vmatprep.subr.mxu0 %v1666_v0 }
 0x12a   : > { %1165 = vmatpush3.xpose.msk.msra.mxu0 %vm512_vm1, %v696_v18 }
 0x1dd   : > { %v594_v14 = vpop.f32.mrf.mxu0 }
 0x1de   : > { %v595_v15 = vadd.f32 %v1082_v13, %v594_v14 }
 0x1df   : > { %v1146_v16 = vpop.f32.mrf.mxu0 }
 0x1e0   : > { %v598_v17 = vmax.f32 %v595_v15, 0.0 }
 0x1e2   : > { %1156 = vmatmul.mubr.msk.f32.vlgmr.msra.gmra.mxu1 %vm512_vm1, %v598_v17 }
 0x1e3   : > { %1175 = vmatprep.mubr.msk.f32.mxu1 %vm1667_vm0, %v1666_v0  ;;  %1170 = vmatpush3.xpose.msk.msra.mxu1 %vm512_vm1, %v795_v19 }
 0x1e4   : > { %1171 = vmatprep.subr.mxu1 %v1666_v0 }
 0x1e7   : > { %1172 = vmatpush3.xpose.msk.msra.mxu1 %vm512_vm1, %v794_v20 }
 0x1e8   : > { %1173 = vmatprep.subr.mxu1 %v1666_v0 }
 0x1eb   : > { %1174 = vmatpush3.xpose.msk.msra.mxu1 %vm512_vm1, %v793_v26 }
 0x2a2   : > { %v691_v22 = vpop.f32.mrf.mxu1 }
 0x2a3   : > { %v692_v23 = vadd.f32 %v1088_v21, %v691_v22 }
 0x2a4   : > { %v1157_v24 = vpop.f32.mrf.mxu1 }
 0x2a5   : > { %v695_v25 = vmax.f32 %v692_v23, 0.0 }
 0x2a7   : > { %1167 = vmatmul.mubr.msk.f32.vlgmr.msra.gmra.mxu0 %vm512_vm1, %v695_v25 }
 0x367   : > { %v788_v28 = vpop.f32.mrf.mxu0 }
 0x368   : > { %v789_v29 = vadd.f32 %v1094_v27, %v788_v28 }
 0x369   : > { %v1168_v30 = vpop.f32.mrf.mxu0 }
 0x36a   : > { %v792_v31 = vmax.f32 %v789_v29, 0.0 }
 0x36c   : > { %1176 = vmatmul.mubr.msk.f32.vlgmr.msra.gmra.mxu1 %vm512_vm1, %v792_v31 }
 0x42c   : > { %v881_v33 = vpop.f32.mrf.mxu1 }
 0x42d   : > { %v882_v34 = vadd.f32 %v1100_v32, %v881_v33 }
 0x42e   : > { %v1177_v35 = vpop.f32.mrf.mxu1 }
 0x42f   : > { %v885_v36 = vmax.f32 %v882_v34, 0.0 }
 0x431   : > { %887 = vst.msk [vmem:[%s348_s6] sm:$0xff] %vm886_vm2, %v885_v36 }
 0x432   : > { %1572 = shalt.err (!%p1569_p12)
}
 0x433   : > { %s1573_s15 = scalar_lea.hbm %s900_s24, 128  ;;  %s1577_s18 = scalar_lea.hbm %s2062_s10, 256 }
 0x434   : > { %p1574_p13 = scmp.ne.s32.totalorder %s900_s24, %s1573_s15  ;;  %p1578_p8 = scmp.lt.s32.totalorder %s900_s24, %s2062_s10 }
 0x435   : > { %p1579_p11 = scmp.lt.s32.totalorder %s1577_s18, %s1573_s15 }
 0x436   : > { %p1575_p4 = pnand %p1574_p13, %p1765_p5 }
 0x437   : > { %p1580_p0 = por %p1579_p11, %p1578_p8 }
 0x438   : > { %p1576_p7 = pneg %p1575_p4 }
 0x43a   : > { %p1581_p2 = pnand %p1580_p0, %p1576_p7 }
 0x43c   : > { %1584 = shalt.err (!%p1581_p2)
}
 0x43d   : > { %1194 = dma.vmem_to_hbm [thread:$0]  (%p1765_p5), %s903_s28, 128, %s900_s24, %s889_s26  }
 0x43e PF: > { %s2087_s21 = sld [smem:[#allocation46_spill]]  ;;  %p1221_p1 = scmp.ge.s32.totalorder %s1649_s19, 2 }
 0x440   : > { %p1210_p3 = pnand %p1221_p1, %p1769_p6 }
 0x442   : > { %p1211_p9 = pneg %p1210_p3 }
 0x444   : > { %s914_s22 = sand.u32 1, %s2087_s21  }
 0x445   : > { %s915_s2 = scalar_lea.sflag [#allocation8], %s914_s22 }
 0x446   : > { %1632 = dma.done.wait (%p1211_p9), %s915_s2, 128  }
 0x447   : > { %1634 = vsyncadd (%p1211_p9), %s915_s2, 4294967168  ;;  %s2089_s19 = sld [smem:[#allocation48_spill]]  ;;  %s2092_s16 = smov %s1641_s17 }
 0x448   : > { %s2090_s29 = sld [smem:[#allocation47_spill]] }
 0x449   : > { %s2091_s18 = sld [smem:[#allocation49_spill]] }
 0x44d   : > { %p27_p10 = scmp.ge.s32.totalorder %s2089_s19, 4  }
 0x44e   : > { %s2093_s17 = smov %s2090_s29 }
 0x44f   :  { %29 = sbr.rel (!%p27_p10) target bundleno = 15 (0xf), region = 162 }
 0x454   :  { %920 = vsyncpa [#allocation7], 1 }
 0x455   :  { %922 = vsyncpa [#allocation7 + $0x1], 1 }
 0x456   :  { %923 = vsyncpa [#allocation10], 1 }
 0x457   :  { %924 = vsyncpa [#allocation13], 1 }
 0x458   :  { %925 = vsyncpa [#allocation8], 1 }
 0x459   :  { %927 = vsyncpa [#allocation8 + $0x1], 1 }
 0x45a   :  { %928 = vsyncmov [#allocation3] }
 0x45d   :  { %s929_s25 = vpop.sfrf %928 }
 0x45e   :  { %p1109_p5 = scmp.ne.s32.totalorder %s929_s25, 0 }
 0x460   :  { %933 = shalt.err (%p1109_p5)  }
 0x461   :  { %935 = vsyncmov [#allocation3 + $0x1] }
 0x464   :  { %s936_s28 = vpop.sfrf %935 }
 0x465   :  { %p1110_p6 = scmp.ne.s32.totalorder %s936_s28, 0 }
 0x467   :  { %940 = shalt.err (%p1110_p6)  }
 0x468   :  { %942 = vsyncmov [#allocation3 + $0x2] }
 0x46b   :  { %s943_s30 = vpop.sfrf %942 }
 0x46c   :  { %p1111_p12 = scmp.ne.s32.totalorder %s943_s30, 0 }
 0x46e   :  { %947 = shalt.err (%p1111_p12)  }
 0x46f   :  { %949 = vsyncmov [#allocation3 + $0x3] }
 0x472   :  { %s950_s19 = vpop.sfrf %949 }
 0x473   :  { %p1112_p13 = scmp.ne.s32.totalorder %s950_s19, 0 }
 0x475   :  { %954 = shalt.err (%p1112_p13)  }
 0x476   :  { %956 = vsyncmov [#allocation3 + $0x4] }
 0x479   :  { %s957_s1 = vpop.sfrf %956 }
 0x47a   :  { %p1113_p4 = scmp.ne.s32.totalorder %s957_s1, 0 }
 0x47c   :  { %961 = shalt.err (%p1113_p4)  }
 0x47d   :  { %963 = vsyncmov [#allocation3 + $0x5] }
 0x480   :  { %s964_s3 = vpop.sfrf %963 }
 0x481   :  { %p1114_p7 = scmp.ne.s32.totalorder %s964_s3, 0 }
 0x483   :  { %968 = shalt.err (%p1114_p7)  }
 0x484   :  { %970 = vsyncmov [#allocation3 + $0x6] }
 0x487   :  { %s971_s5 = vpop.sfrf %970 }
 0x488   :  { %p1115_p8 = scmp.ne.s32.totalorder %s971_s5, 0 }
 0x48a   :  { %975 = shalt.err (%p1115_p8)  }
 0x48b   :  { %977 = vsyncmov [#allocation3 + $0x7] }
 0x48e   :  { %s978_s7 = vpop.sfrf %977 }
 0x48f   :  { %p1116_p11 = scmp.ne.s32.totalorder %s978_s7, 0 }
 0x491   :  { %982 = shalt.err (%p1116_p11)  }

</bundles_post_ra>
